<compile_context>
chip_gen: v6e
topology: v6e:2x2x1
jax: 0.10.0
libtpu: 0.0.40
codegen_flags: <defaults>
</compile_context>

<pallas_src>
import jax
import jax.numpy as jnp
from jax.experimental import pallas as pl
from jax.experimental.pallas import tpu as pltpu


def _cwn_head_kernel(x_ref, batch_ref, w_ref, b_ref, out_ref, acc_ref):
    """x_ref: [TILE_N, F] f32, batch_ref: [1, TILE_N] i32, w_ref: [1, F] f32,
    b_ref: [1, 1] f32, out_ref: [1, G_pad] f32, acc_ref (scratch): [G_pad, F] f32."""
    pid = pl.program_id(0)

    @pl.when(pid == 0)
    def _init():
        acc_ref[...] = jnp.zeros_like(acc_ref)

    x = x_ref[...]                                   # [TILE_N, F]
    batch_row = batch_ref[...]                       # [1, TILE_N] int32 graph ids
    g_pad = acc_ref.shape[0]
    tile_n = x.shape[0]

    # Lane-dense one-hot mask: graphs on the sublane axis, cells on lanes.
    gid = jax.lax.broadcasted_iota(jnp.int32, (g_pad, tile_n), 0)   # [G_pad, TILE_N]
    mask = (gid == batch_row).astype(x.dtype)                       # bcast over sublanes

    # Segment-sum contribution of this tile: [G_pad, TILE_N] @ [TILE_N, F] on MXU.
    acc_ref[...] += jax.lax.dot_general(
        mask, x,
        dimension_numbers=(((1,), (0,)), ((), ())),
        preferred_element_type=jnp.float32,
    )

    @pl.when(pid == pl.num_programs(0) - 1)
    def _finalize():
        # Final Linear(2*num_hidden -> 1); emit lane-dense [1, G_pad].
        pred = jax.lax.dot_general(
            w_ref[...], acc_ref[...],
            dimension_numbers=(((1,), (1,)), ((), ())),   # contract F
            preferred_element_type=jnp.float32,
        )                                                 # [1, G_pad]
        out_ref[...] = (pred + b_ref[...]).astype(out_ref.dtype)


def cwn_head_forward(cell_features, cell_batch, weight, bias, num_graphs,
                     *, tile_n=2048):
    """cell_features: list of [N_i, 2H] arrays; cell_batch: list of [N_i] int arrays.
    weight: [1, 2H] (nn.Linear weight), bias: [1]. Returns [num_graphs] f32."""
    # Glue: one contiguous [N, F] stream for the kernel.
    # TODO(synk): for very large N, pass per-segment arrays + scalar-prefetched
    # offsets instead of this concat to avoid an extra HBM read+write of X.
    all_feats = jnp.concatenate(cell_features, axis=0).astype(jnp.float32)  # [N, F]
    all_batch = jnp.concatenate(cell_batch, axis=0).astype(jnp.int32)       # [N]
    n, f = all_feats.shape

    # Pad N up to a multiple of tile_n; padded rows get batch id -1 so the
    # one-hot mask zeroes them out.
    n_pad = pl.cdiv(n, tile_n) * tile_n
    if n_pad != n:
        all_feats = jnp.pad(all_feats, ((0, n_pad - n), (0, 0)))
        all_batch = jnp.pad(all_batch, ((0, n_pad - n),), constant_values=-1)

    g_pad = max(8, ((num_graphs + 7) // 8) * 8)
    num_tiles = n_pad // tile_n

    batch_lane = all_batch.reshape(1, n_pad)               # lane-major ids
    w_row = weight.reshape(1, f).astype(jnp.float32)       # [1, F]
    b_2d = bias.reshape(1, 1).astype(jnp.float32)          # [1, 1]

    out = pl.pallas_call(
        _cwn_head_kernel,
        out_shape=jax.ShapeDtypeStruct((1, g_pad), jnp.float32),
        grid_spec=pltpu.PrefetchScalarGridSpec(
            num_scalar_prefetch=0,
            grid=(num_tiles,),
            in_specs=[
                pl.BlockSpec((tile_n, f), lambda i: (i, 0)),    # X tile (streamed)
                pl.BlockSpec((1, tile_n), lambda i: (0, i)),    # batch ids (streamed)
                pl.BlockSpec((1, f), lambda i: (0, 0)),         # weight (resident)
                pl.BlockSpec((1, 1), lambda i: (0, 0)),         # bias (resident)
            ],
            out_specs=pl.BlockSpec((1, g_pad), lambda i: (0, 0)),
            scratch_shapes=[pltpu.VMEM((g_pad, f), jnp.float32)],  # pooled accumulator
        ),
        compiler_params=pltpu.CompilerParams(
            dimension_semantics=("arbitrary",)),   # N axis is a reduction
    )(all_feats, batch_lane, w_row, b_2d)

    return out[0, :num_graphs]  # squeeze(1) + drop G padding


def _reference(cell_features, cell_batch, weight, bias, num_graphs):
    x = jnp.concatenate(cell_features, axis=0).astype(jnp.float32)
    b = jnp.concatenate(cell_batch, axis=0).astype(jnp.int32)
    pooled = jax.ops.segment_sum(x, b, num_segments=num_graphs)
    return pooled @ weight.reshape(-1).astype(jnp.float32) + bias[0]


if __name__ == "__main__":
    num_hidden = 16
    feat_dim = 2 * num_hidden          # Linear input dim = 2 * num_hidden

    key = jax.random.PRNGKey(0)
    k_w, k_b, k0, k1, k2, k3, k4, k5, kb0, kb1, kb2 = jax.random.split(key, 11)

    # nn.Linear(2*num_hidden, 1) parameters.
    weight = jax.random.normal(k_w, (1, feat_dim), dtype=jnp.float32) * 0.1
    bias = jax.random.normal(k_b, (1,), dtype=jnp.float32) * 0.1

    # --- Test 1: tiny CWN-style lists (single grid step) -------------------
    num_graphs = 3
    n_cells = [6, 5, 4]
    feat_keys = [k0, k1, k2]
    cell_features = [
        jax.random.normal(feat_keys[i], (n_cells[i], feat_dim), dtype=jnp.float32)
        for i in range(3)
    ]
    cell_batch = [
        jnp.array([0, 0, 1, 1, 2, 2], dtype=jnp.int32),
        jnp.array([0, 1, 1, 2, 2], dtype=jnp.int32),
        jnp.array([0, 1, 2, 2], dtype=jnp.int32),
    ]
    pred = cwn_head_forward(cell_features, cell_batch, weight, bias, num_graphs,
                            tile_n=256)
    pred = jax.block_until_ready(pred)
    ref = _reference(cell_features, cell_batch, weight, bias, num_graphs)
    assert pred.shape == (num_graphs,)
    assert jnp.allclose(pred, ref, atol=1e-4, rtol=1e-5), (pred, ref)

    # --- Test 2: multi-tile grid (accumulation across N tiles, tail pad) ---
    num_graphs2 = 5
    n_cells2 = [300, 250, 200]                       # 750 cells -> 3 tiles of 256
    feat_keys2 = [k3, k4, k5]
    batch_keys2 = [kb0, kb1, kb2]
    cell_features2 = [
        jax.random.normal(feat_keys2[i], (n_cells2[i], feat_dim), dtype=jnp.float32)
        for i in range(3)
    ]
    cell_batch2 = [
        jax.random.randint(batch_keys2[i], (n_cells2[i],), 0, num_graphs2,
                           dtype=jnp.int32)
        for i in range(3)
    ]
    pred2 = cwn_head_forward(cell_features2, cell_batch2, weight, bias, num_graphs2,
                             tile_n=256)
    pred2 = jax.block_until_ready(pred2)
    ref2 = _reference(cell_features2, cell_batch2, weight, bias, num_graphs2)
    assert pred2.shape == (num_graphs2,)
    assert jnp.allclose(pred2, ref2, atol=1e-4, rtol=1e-5), (pred2, ref2)

    print("KERNEL_OK")
</pallas_src>

<mosaic_0001>
module attributes {stable_mosaic.version = 11 : i64} {
  func.func @_cwn_head_kernel(%arg0: i32, %arg1: memref<256x32xf32, #tpu.memory_space<vmem>>, %arg2: memref<1x256xi32, #tpu.memory_space<vmem>>, %arg3: memref<1x32xf32, #tpu.memory_space<vmem>>, %arg4: memref<1x1xf32, #tpu.memory_space<vmem>>, %arg5: memref<1x8xf32, #tpu.memory_space<vmem>>, %arg6: memref<8x32xf32, #tpu.memory_space<vmem>>) attributes {dimension_semantics = [#tpu.dimension_semantics<arbitrary>], iteration_bounds = array<i64: 1>, scalar_prefetch = 0 : i64, scratch_operands = 1 : i64, tpu.core_type = #tpu.core_type<tc>, window_params = [{transform_indices = @transform_0, window_bounds = array<i64: 256, 32>}, {transform_indices = @transform_1, window_bounds = array<i64: 1, 256>}, {pipeline_mode = #tpu.pipeline_mode<synchronous>, transform_indices = @transform_2, window_bounds = array<i64: 1, 32>}, {pipeline_mode = #tpu.pipeline_mode<synchronous>, transform_indices = @transform_3, window_bounds = array<i64: 1, 1>}, {pipeline_mode = #tpu.pipeline_mode<synchronous>, transform_indices = @transform_4, window_bounds = array<i64: 1, 8>}]} {
    %c0_i32 = arith.constant 0 : i32
    %0 = arith.cmpi eq, %arg0, %c0_i32 : i32
    %1 = arith.extui %0 : i1 to i32
    %c0_i32_0 = arith.constant 0 : i32
    %2 = arith.cmpi ne, %1, %c0_i32_0 : i32
    scf.if %2 {
      %cst_10 = arith.constant 0.000000e+00 : f32
      %17 = vector.broadcast %cst_10 : f32 to vector<8x32xf32>
      %c0_11 = arith.constant 0 : index
      %c0_12 = arith.constant 0 : index
      %18 = vector.load %arg6[%c0_11, %c0_12] : memref<8x32xf32, #tpu.memory_space<vmem>>, vector<8x32xf32>
      tpu.vector_store %arg6[%c0_11, %c0_12], %17 {strides = array<i32>} : memref<8x32xf32, #tpu.memory_space<vmem>>, vector<8x32xf32>,
    } else {
    }
    %c0 = arith.constant 0 : index
    %c0_1 = arith.constant 0 : index
    %3 = vector.load %arg1[%c0, %c0_1] : memref<256x32xf32, #tpu.memory_space<vmem>>, vector<256x32xf32>
    %c0_2 = arith.constant 0 : index
    %c0_3 = arith.constant 0 : index
    %4 = vector.load %arg2[%c0_2, %c0_3] : memref<1x256xi32, #tpu.memory_space<vmem>>, vector<1x256xi32>
    %5 = tpu.iota {dimensions = array<i32: 0>} : vector<8x256xi32>
    %6 = vector.broadcast %4 : vector<1x256xi32> to vector<8x256xi32>
    %7 = arith.cmpi eq, %5, %6 : vector<8x256xi32>
    %8 = arith.extui %7 : vector<8x256xi1> to vector<8x256xi32>
    %9 = arith.sitofp %8 : vector<8x256xi32> to vector<8x256xf32>
    %c0_4 = arith.constant 0 : index
    %c0_5 = arith.constant 0 : index
    %10 = vector.load %arg6[%c0_4, %c0_5] : memref<8x32xf32, #tpu.memory_space<vmem>>, vector<8x32xf32>
    %cst = arith.constant dense<0.000000e+00> : vector<8x32xf32>
    %11 = tpu.matmul %9, %3, %cst {dimension_numbers = #tpu.dot_dimension_numbers<[1], [0], [0], [1], [0, 0, 1, 1], [], []>} : vector<8x256xf32>, vector<256x32xf32>, vector<8x32xf32> -> vector<8x32xf32>
    %12 = arith.addf %10, %11 : vector<8x32xf32>
    %c0_6 = arith.constant 0 : index
    %c0_7 = arith.constant 0 : index
    %13 = vector.load %arg6[%c0_6, %c0_7] : memref<8x32xf32, #tpu.memory_space<vmem>>, vector<8x32xf32>
    tpu.vector_store %arg6[%c0_6, %c0_7], %12 {strides = array<i32>} : memref<8x32xf32, #tpu.memory_space<vmem>>, vector<8x32xf32>,
    %c0_i32_8 = arith.constant 0 : i32
    %14 = arith.cmpi eq, %arg0, %c0_i32_8 : i32
    %15 = arith.extui %14 : i1 to i32
    %c0_i32_9 = arith.constant 0 : i32
    %16 = arith.cmpi ne, %15, %c0_i32_9 : i32
    scf.if %16 {
      %c0_10 = arith.constant 0 : index
      %c0_11 = arith.constant 0 : index
      %17 = vector.load %arg3[%c0_10, %c0_11] : memref<1x32xf32, #tpu.memory_space<vmem>>, vector<1x32xf32>
      %c0_12 = arith.constant 0 : index
      %c0_13 = arith.constant 0 : index
      %18 = vector.load %arg6[%c0_12, %c0_13] : memref<8x32xf32, #tpu.memory_space<vmem>>, vector<8x32xf32>
      %cst_14 = arith.constant dense<0.000000e+00> : vector<1x8xf32>
      %19 = tpu.matmul %17, %18, %cst_14 {dimension_numbers = #tpu.dot_dimension_numbers<[1], [1], [0], [0], [0, 0, 1, 0], [], []>} : vector<1x32xf32>, vector<8x32xf32>, vector<1x8xf32> -> vector<1x8xf32>
      %c0_15 = arith.constant 0 : index
      %c0_16 = arith.constant 0 : index
      %20 = vector.load %arg4[%c0_15, %c0_16] : memref<1x1xf32, #tpu.memory_space<vmem>>, vector<1x1xf32>
      %21 = vector.broadcast %20 : vector<1x1xf32> to vector<1x8xf32>
      %22 = arith.addf %19, %21 : vector<1x8xf32>
      %c0_17 = arith.constant 0 : index
      %c0_18 = arith.constant 0 : index
      %23 = vector.load %arg5[%c0_17, %c0_18] : memref<1x8xf32, #tpu.memory_space<vmem>>, vector<1x8xf32>
      tpu.vector_store %arg5[%c0_17, %c0_18], %22 {strides = array<i32>} : memref<1x8xf32, #tpu.memory_space<vmem>>, vector<1x8xf32>,
    } else {
    }
    return
  }
  func.func @transform_0(%arg0: i32) -> (i32, i32) {
    %c0_i32 = arith.constant 0 : i32
    %c0_i32_0 = arith.constant 0 : i32
    return %arg0, %c0_i32 : i32, i32
  }
  func.func @transform_1(%arg0: i32) -> (i32, i32) {
    %c0_i32 = arith.constant 0 : i32
    %c0_i32_0 = arith.constant 0 : i32
    return %c0_i32, %arg0 : i32, i32
  }
  func.func @transform_2(%arg0: i32) -> (i32, i32) {
    %c0_i32 = arith.constant 0 : i32
    %c0_i32_0 = arith.constant 0 : i32
    %c0_i32_1 = arith.constant 0 : i32
    return %c0_i32, %c0_i32_0 : i32, i32
  }
  func.func @transform_3(%arg0: i32) -> (i32, i32) {
    %c0_i32 = arith.constant 0 : i32
    %c0_i32_0 = arith.constant 0 : i32
    %c0_i32_1 = arith.constant 0 : i32
    return %c0_i32, %c0_i32_0 : i32, i32
  }
  func.func @transform_4(%arg0: i32) -> (i32, i32) {
    %c0_i32 = arith.constant 0 : i32
    %c0_i32_0 = arith.constant 0 : i32
    %c0_i32_1 = arith.constant 0 : i32
    return %c0_i32, %c0_i32_0 : i32, i32
  }
}

</mosaic_0001>

<bundles_post_ra>
// kernel: tpu_custom_call.1
= control target key start
LH: loop header
LB: loop body
LE: loop exit
PB: predicated region body
PF: predicated region fallthrough
CT: control target
= control target key end

     0   :  { %s480_s0 = inlined_call_operand.vmem [shape: f32[256,32], index: 0, kind: input, shape index: {}]   ;;  %s481_s1 = inlined_call_operand.vmem [shape: s32[1,256], index: 1, kind: input, shape index: {}]   ;;  %s482_s2 = inlined_call_operand.vmem [shape: f32[1,32], index: 2, kind: input, shape index: {}]   ;;  %s483_s3 = inlined_call_operand.<no memory space> [shape: f32[1,1], index: 3, kind: input, shape index: {}]   ;;  %s484_s4 = inlined_call_operand.hbm [shape: f32[1,8], index: 4, kind: output, shape index: {}]  }
   0x1   :  { %v9_v0 = vstv %s483_s3 }
   0x2   :  { %10 = vst [vmem:[#allocation3] sm:$0x1] %v9_v0 }
   0x3   :  { %v57_v1 = vld [vmem:[%s480_s0 + $0xf8] sm:$0xff]  ;;  %v56_v3 = vld [vmem:[%s480_s0 + $0xf0] sm:$0xff]  ;;  %v59_v4 = vlaneseq  ;;  %v55_v6 = vld [vmem:[%s480_s0 + $0xe8] sm:$0xff] }
   0x4   :  { %v41_v2 = vld [vmem:[%s480_s0 + $0x78] sm:$0xff]  ;;  %262 = vmatprep.subr.mxu0 %v57_v1  ;;  %v40_v5 = vld [vmem:[%s480_s0 + $0x70] sm:$0xff]  ;;  %v39_v7 = vld [vmem:[%s480_s0 + $0x68] sm:$0xff] }
   0x5   :  { %263 = vmatpush3.msra.mxu0 %v41_v2  ;;  %v383_v8 = vshrl.u32 %v59_v4, 7  ;;  %v54_v9 = vld [vmem:[%s480_s0 + $0xe0] sm:$0xff]  ;;  %v53_v11 = vld [vmem:[%s480_s0 + $0xd8] sm:$0xff]  ;;  %v52_v14 = vld [vmem:[%s480_s0 + $0xd0] sm:$0xff] }
   0x6   :  { %264 = vmatprep.subr.mxu0 %v56_v3  ;;  %v38_v10 = vld [vmem:[%s480_s0 + $0x60] sm:$0xff]  ;;  %v37_v12 = vld [vmem:[%s480_s0 + $0x58] sm:$0xff]  ;;  %v36_v15 = vld [vmem:[%s480_s0 + $0x50] sm:$0xff] }
   0x7   :  { %265 = vmatpush3.msra.mxu0 %v40_v5  ;;  %v67_v13 = vsub.s32 1, %v383_v8  ;;  %v51_v16 = vld [vmem:[%s480_s0 + $0xc8] sm:$0xff]  ;;  %v58_v17 = vld [vmem:[%s481_s1] sm:$0x3] }
   0x8   :  { %266 = vmatprep.subr.mxu0 %v55_v6  ;;  %v35_v18 = vld [vmem:[%s480_s0 + $0x48] sm:$0xff] }
   0x9   :  { %267 = vmatpush3.msra.mxu0 %v39_v7  ;;  %v68_v19 = vrot.slane %v58_v17, %v67_v13 }
   0xa   :  { %268 = vmatprep.subr.mxu0 %v54_v9 }
   0xb   :  { %269 = vmatpush3.msra.mxu0 %v38_v10 }
   0xc   :  { %270 = vmatprep.subr.mxu0 %v53_v11 }
   0xd   :  { %271 = vmatpush3.msra.mxu0 %v37_v12 }
   0xe   :  { %272 = vmatprep.subr.mxu0 %v52_v14 }
   0xf   :  { %11 = vsyncpa [#allocation5], 0  ;;  %273 = vmatpush3.msra.mxu0 %v36_v15  ;;  %v50_v20 = vld [vmem:[%s480_s0 + $0xc0] sm:$0xff]  ;;  %vm70_vm0 = vcmp.eq.s32.totalorder %v383_v8, %v68_v19  ;;  %v49_v22 = vld [vmem:[%s480_s0 + $0xb8] sm:$0xff]  ;;  %v332_v23 = vmov 1.0   ;;  %v63_v32 = vsub.s32 0, %v383_v8 }
  0x10   :  { %274 = vmatprep.subr.mxu0 %v51_v16  ;;  %v34_v21 = vld [vmem:[%s480_s0 + $0x40] sm:$0xff]  ;;  %258 = vmatprep.mubr.msk.f32.mxu0 %vm70_vm0, %v332_v23  ;;  %v33_v24 = vld [vmem:[%s480_s0 + $0x38] sm:$0xff]  ;;  %v48_v25 = vld [vmem:[%s480_s0 + $0xb0] sm:$0xff]  ;;  %vm24_vm2 = vcmask 261120   ;;  %v333_v41 = vmov 0.0   ;;  %vm334_vm3 = vmmov 0  }
  0x11   :  { %275 = vmatpush3.msra.mxu0 %v35_v18  ;;  %v32_v26 = vld [vmem:[%s480_s0 + $0x30] sm:$0xff]  ;;  %v47_v27 = vld [vmem:[%s480_s0 + $0xa8] sm:$0xff]  ;;  %v46_v29 = vld [vmem:[%s480_s0 + $0xa0] sm:$0xff]  ;;  %v64_v37 = vrot.slane %v58_v17, %v63_v32  ;;  %25 = vst.msk [vmem:[#allocation2] sm:$0xff] %vm24_vm2, %v333_v41  ;;  %299 = vmatprep.subr.mxu1 %v333_v41  ;;  %v335_v43 = vmov 0   ;;  %s336_s27 = smov [#allocation4]  }
  0x12   :  { %276 = vmatprep.subr.mxu0 %v50_v20  ;;  %v31_v28 = vld [vmem:[%s480_s0 + $0x28] sm:$0xff]  ;;  %v30_v30 = vld [vmem:[%s480_s0 + $0x20] sm:$0xff]  ;;  %v45_v31 = vld [vmem:[%s480_s0 + $0x98] sm:$0xff]  ;;  %301 = vmatprep.mubr.msk.f32.mxu1 %vm334_vm3, %v333_v41  ;;  %s248_s28 = sshll.u32 %s336_s27, 4  ;;  %vm240_vm4 = vcmask 57344   ;;  %s249_s28 = int_to_ptr.vmem [resolvable:$true] %s248_s28 }
  0x13   :  { %277 = vmatpush3.msra.mxu0 %v34_v21  ;;  %v29_v33 = vld [vmem:[%s480_s0 + $0x18] sm:$0xff]  ;;  %v44_v34 = vld [vmem:[%s480_s0 + $0x90] sm:$0xff]  ;;  %v43_v36 = vld [vmem:[%s480_s0 + $0x88] sm:$0xff]  ;;  %vm69_vm1 = vcmp.eq.s32.totalorder %v383_v8, %v64_v37  ;;  %309 = vset.pattern.permute.xlu0 %v335_v43  ;;  %s310_s29 = scalar_lea.vmem %s249_s28, 16  ;;  %s314_s30 = scalar_lea.vmem %s249_s28, 32 }
  0x14   :  { %278 = vmatprep.subr.mxu0 %v49_v22  ;;  %v28_v35 = vld [vmem:[%s480_s0 + $0x10] sm:$0xff]  ;;  %v27_v38 = vld [vmem:[%s480_s0 + $0x8] sm:$0xff]  ;;  %v42_v39 = vld [vmem:[%s480_s0 + $0x80] sm:$0xff]  ;;  %p311_p0 = scmp.ne.s32.totalorder %s249_s28, %s310_s29  ;;  %p315_p1 = scmp.lt.s32.totalorder %s249_s28, %s249_s28 }
  0x15   :  { %279 = vmatpush3.msra.mxu0 %v33_v24  ;;  %v26_v40 = vld [vmem:[%s480_s0] sm:$0xff]  ;;  %v154_v42 = vld [vmem:[#allocation3] sm:$0x1]  ;;  %p316_p2 = scmp.lt.s32.totalorder %s314_s30, %s310_s29 }
  0x16   :  { %280 = vmatprep.subr.mxu0 %v48_v25  ;;  %157 = vperm.xlu0 %309, %v154_v42   ;;  %v152_v50 = vld [vmem:[%s482_s2] sm:$0x1] }
  0x17   :  { %281 = vmatpush3.msra.mxu0 %v32_v26  ;;  %p317_p3 = por %p316_p2, %p315_p1 }
  0x18   :  { %282 = vmatprep.subr.mxu0 %v47_v27  ;;  %v75_v46 = vld [vmem:[#allocation2] sm:$0xff] }
  0x19   :  { %283 = vmatpush3.msra.mxu0 %v31_v28  ;;  %p318_p4 = pnand %p317_p3, %p311_p0 }
  0x1a   :  { %284 = vmatprep.subr.mxu0 %v46_v29 }
  0x1b   :  { %285 = vmatpush3.msra.mxu0 %v30_v30 }
  0x1c   :  { %286 = vmatprep.subr.mxu0 %v45_v31 }
  0x1d   :  { %287 = vmatpush3.msra.mxu0 %v29_v33 }
  0x1e   :  { %288 = vmatprep.subr.mxu0 %v44_v34 }
  0x1f   :  { %289 = vmatpush3.msra.mxu0 %v28_v35 }
  0x20   :  { %290 = vmatprep.subr.mxu0 %v43_v36 }
  0x21   :  { %291 = vmatpush3.msra.mxu0 %v27_v38 }
  0x22   :  { %292 = vmatprep.subr.mxu0 %v42_v39 }
  0x23   :  { %293 = vmatpush3.msra.mxu0 %v26_v40 }
  0x24   :  { %259 = vmatmul.mubr.msk.f32.vlgmr.msra.gmra.mxu0 %vm69_vm1, %v332_v23 }
  0x91   :  { %v158_v51 = vpop.permute.xlu0 %157 }
  0x92   :  { %v163_v52 = vrot.slane %v158_v51, %v63_v32 }
  0xe4   :  { %v294_v44 = vpop.f32.mrf.mxu0 }
  0xe6   :  { %v295_v45 = vpop.f32.mrf.mxu0 }
  0xe7   :  { %v296_v47 = vadd.f32 %v295_v45, %v294_v44 }
  0xe9   :  { %v146_v48 = vadd.f32 %v296_v47, %v75_v46 }
  0xeb   :  { %148 = vst.msk [vmem:[#allocation2] sm:$0xff] %vm24_vm2, %v146_v48 }
  0xf2   :  { %v153_v49 = vld [vmem:[#allocation2] sm:$0xff] }
  0xf3   :  { %300 = vmatpush3.xpose.msk.msra.mxu1 %vm24_vm2, %v153_v49 }
  0xf6   :  { %302 = vmatmul.mubr.msk.f32.vlgmr.msra.gmra.mxu1 %vm24_vm2, %v152_v50 }
 0x1b6   :  { %v236_v53 = vpop.f32.mrf.mxu1 }
 0x1b7   :  { %v237_v54 = vadd.f32 %v236_v53, %v163_v52 }
 0x1b8   :  { %v303_v55 = vpop.f32.mrf.mxu1 }
 0x1b9   :  { %241 = vst.msk [vmem:[#allocation4] sm:$0x1] %vm240_vm4, %v237_v54 }
 0x1ba   :  { %321 = shalt.err (!%p318_p4)
}
 0x1bb   :  { %251 = dma.vmem_to_hbm [thread:$0]  %s249_s28, 16, %s484_s4, [#allocation5]  }
 0x1bc   :  { %330 = dma.done.wait [#allocation5], 16  }
 0x1bd   :  { %331 = vsyncadd [#allocation5], 4294967280 }
 0x1be   :  { %255 = vsyncpa [#allocation5], 1 }

</bundles_post_ra>
